<compile_context>
chip_gen: v7x
topology: tpu7x:2x2x1
jax: 0.10.0
libtpu: 0.0.40
codegen_flags: <defaults>
</compile_context>

<pallas_src>
import functools

import jax
import jax.numpy as jnp
from jax.experimental import pallas as pl
from jax.experimental.pallas import tpu as pltpu

EPS = 1e-10


def _l2norm_kernel(x_ref, w_ref, o_ref, *, approx_recip):
    # x_ref: (C, TL) -- one image, all channels (sublanes), TL pixels (lanes)
    # w_ref: (C, 1)  -- per-channel scale, resident across the whole grid
    x = x_ref[...].astype(jnp.float32)
    w = w_ref[...].astype(jnp.float32)
    sq_sum = jnp.sum(x * x, axis=0, keepdims=True)          # (1, TL)
    norm = jnp.sqrt(sq_sum) + EPS                            # eps outside sqrt
    if approx_recip:
        inv = pl.reciprocal(norm, approx=True)               # EUP vrcp path
    else:
        inv = 1.0 / norm                                     # exact, matches torch
    o_ref[...] = (x * (w * inv)).astype(o_ref.dtype)


def l2norm(
    x_nchw,
    weight,
    *,
    target_block_bytes=4 << 20,   # ~4 MiB blocks: near HBM roofline on all gens
    approx_reciprocal=False,      # True -> EUP approx recip (~1e-3 rel deviation)
    min_grid_steps=2,             # keep both v7x TensorCores busy
):
    """x_nchw: (N, C, H, W); weight: (C,). Returns (N, C, H, W)."""
    N, C, H, W = x_nchw.shape
    HW = H * W
    # Free reshape of NCHW: channels -> sublane axis, pixels -> lane axis.
    x3 = x_nchw.reshape(N, C, HW)
    itemsize = jnp.dtype(x3.dtype).itemsize

    # ---- lane-tile selection -------------------------------------------------
    hw_units = pl.cdiv(HW, 128)                       # padded HW in 128-lane units
    # Target lanes per block from the byte budget; floor raised to 512 lanes so
    # large-C maps (512-2048 f32) don't collapse to tiny, overhead-dominated tiles.
    tl_units = max(4, (target_block_bytes // (C * itemsize)) // 128)
    tl_units = min(tl_units, hw_units)
    num_blocks = pl.cdiv(hw_units, tl_units)
    # Guarantee >= min_grid_steps total grid steps (v7x megacore: 2 TCs) so a
    # batch-1, single-tile case doesn't leave a core idle.
    needed_j = pl.cdiv(min_grid_steps, max(N, 1))
    if num_blocks < needed_j:
        num_blocks = min(hw_units, needed_j)
    # Balanced split over 128-lane units: no sub-128 / tiny tail block.
    tl_units = pl.cdiv(hw_units, num_blocks)
    tl = tl_units * 128

    grid = (N, pl.cdiv(HW, tl))   # tail block (if any) is padded by Pallas

    # ---- VMEM budget (explicit, generation-safe) -----------------------------
    # Double-buffered input + output ~= 4x block bytes (+ tiny weight block).
    # Explicit limit covers v5e's 16 MiB scoped default; capped well under
    # v7x's 64 MiB physical VMEM.
    block_bytes = C * tl * itemsize
    vmem_limit = int(min(56 << 20, max(32 << 20, 5 * block_bytes + (1 << 20))))

    w3 = weight.reshape(1, C, 1)

    cost = pl.CostEstimate(
        flops=5 * N * C * HW,                 # square, reduce-add, scale muls
        transcendentals=2 * N * HW,           # sqrt + reciprocal per pixel
        bytes_accessed=2 * N * C * HW * itemsize + C * itemsize,
    )

    kernel = functools.partial(_l2norm_kernel, approx_recip=approx_reciprocal)

    out3 = pl.pallas_call(
        kernel,
        out_shape=jax.ShapeDtypeStruct((N, C, HW), x3.dtype),
        grid_spec=pltpu.PrefetchScalarGridSpec(
            num_scalar_prefetch=0,
            grid=grid,
            in_specs=[
                # x tile: batch dim squeezed -> kernel sees (C, tl)
                pl.BlockSpec((pl.Squeezed(), C, tl), lambda n, j: (n, 0, j)),
                # weight: resident (same block every step) -> kernel sees (C, 1)
                pl.BlockSpec((pl.Squeezed(), C, 1), lambda n, j: (0, 0, 0)),
            ],
            out_specs=pl.BlockSpec((pl.Squeezed(), C, tl), lambda n, j: (n, 0, j)),
        ),
        compiler_params=pltpu.CompilerParams(
            dimension_semantics=("parallel", "parallel"),
            vmem_limit_bytes=vmem_limit,
        ),
        cost_estimate=cost,
    )(x3, w3)

    # Free reshape back to NCHW.
    return out3.reshape(N, C, H, W)


def l2norm_ref(x_nchw, weight):
    """Pure-JAX reference matching the PyTorch forward exactly."""
    norm = jnp.sqrt(jnp.sum(x_nchw**2, axis=1, keepdims=True)) + EPS
    xn = x_nchw / norm
    return weight[None, :, None, None] * xn


if __name__ == "__main__":
    # Module params: n_channels=4, scale (gamma)=20.0 -> weight = constant 20.0
    gamma = 20.0

    # Case 1: small shape consistent with the module (batch=2, C=4, 16x16).
    n_channels = 4
    weight = jnp.full((n_channels,), gamma, dtype=jnp.float32)
    key = jax.random.PRNGKey(0)
    x = jax.random.normal(key, (2, n_channels, 16, 16), dtype=jnp.float32)

    out = jax.block_until_ready(l2norm(x, weight))
    ref = l2norm_ref(x, weight)
    assert out.shape == (2, n_channels, 16, 16)
    assert jnp.allclose(out, ref, atol=1e-5, rtol=1e-5), "mismatch vs reference (case 1)"

    # Case 2: batch=1 (exercises the >=2-grid-step clamp) with HW not a
    # multiple of 128 (19x19=361 -> exercises tail-block padding).
    c2 = 64
    weight2 = jnp.full((c2,), gamma, dtype=jnp.float32)
    x2 = jax.random.normal(jax.random.PRNGKey(0), (1, c2, 19, 19), dtype=jnp.float32)

    out2 = jax.block_until_ready(l2norm(x2, weight2))
    ref2 = l2norm_ref(x2, weight2)
    assert out2.shape == (1, c2, 19, 19)
    assert jnp.allclose(out2, ref2, atol=1e-5, rtol=1e-5), "mismatch vs reference (case 2)"

    print("KERNEL_OK")
</pallas_src>

<mosaic_0001>
module attributes {stable_mosaic.version = 11 : i64} {
  func.func @_l2norm_kernel(%arg0: i32, %arg1: i32, %arg2: memref<1x4x256xf32, #tpu.memory_space<vmem>>, %arg3: memref<1x4x1xf32, #tpu.memory_space<vmem>>, %arg4: memref<1x4x256xf32, #tpu.memory_space<vmem>>) attributes {dimension_semantics = [#tpu.dimension_semantics<parallel>, #tpu.dimension_semantics<parallel>], iteration_bounds = array<i64: 2, 1>, scalar_prefetch = 0 : i64, scratch_operands = 0 : i64, tpu.core_type = #tpu.core_type<tc>, window_params = [{transform_indices = @transform_0, window_bounds = array<i64: 1, 4, 256>}, {pipeline_mode = #tpu.pipeline_mode<synchronous>, transform_indices = @transform_1, window_bounds = array<i64: 1, 4, 1>}, {transform_indices = @transform_2, window_bounds = array<i64: 1, 4, 256>}]} {
    %c0 = arith.constant 0 : index
    %c0_0 = arith.constant 0 : index
    %c0_1 = arith.constant 0 : index
    %0 = vector.load %arg2[%c0, %c0_0, %c0_1] : memref<1x4x256xf32, #tpu.memory_space<vmem>>, vector<1x4x256xf32>
    %1 = vector.shape_cast %0 : vector<1x4x256xf32> to vector<4x256xf32>
    %c0_2 = arith.constant 0 : index
    %c0_3 = arith.constant 0 : index
    %c0_4 = arith.constant 0 : index
    %2 = vector.load %arg3[%c0_2, %c0_3, %c0_4] : memref<1x4x1xf32, #tpu.memory_space<vmem>>, vector<1x4x1xf32>
    %3 = vector.shape_cast %2 : vector<1x4x1xf32> to vector<4x1xf32>
    %4 = arith.mulf %1, %1 : vector<4x256xf32>
    %cst = arith.constant dense<0.000000e+00> : vector<256xf32>
    %5 = vector.multi_reduction <add>, %4, %cst [0] : vector<4x256xf32> to vector<256xf32>
    %6 = vector.shape_cast %5 : vector<256xf32> to vector<1x256xf32>
    %7 = math.sqrt %6 : vector<1x256xf32>
    %cst_5 = arith.constant 1.000000e-10 : f32
    %8 = vector.broadcast %cst_5 : f32 to vector<1x256xf32>
    %9 = arith.addf %7, %8 : vector<1x256xf32>
    %cst_6 = arith.constant 1.000000e+00 : f32
    %10 = vector.broadcast %cst_6 : f32 to vector<1x256xf32>
    %11 = arith.divf %10, %9 : vector<1x256xf32>
    %12 = vector.broadcast %3 : vector<4x1xf32> to vector<4x256xf32>
    %13 = vector.broadcast %11 : vector<1x256xf32> to vector<4x256xf32>
    %14 = arith.mulf %12, %13 : vector<4x256xf32>
    %15 = arith.mulf %1, %14 : vector<4x256xf32>
    %c0_7 = arith.constant 0 : index
    %c0_8 = arith.constant 0 : index
    %c0_9 = arith.constant 0 : index
    %16 = vector.load %arg4[%c0_7, %c0_8, %c0_9] : memref<1x4x256xf32, #tpu.memory_space<vmem>>, vector<1x4x256xf32>
    %17 = vector.shape_cast %16 : vector<1x4x256xf32> to vector<4x256xf32>
    %18 = vector.shape_cast %15 : vector<4x256xf32> to vector<1x4x256xf32>
    tpu.vector_store %arg4[%c0_7, %c0_8, %c0_9], %18 {strides = array<i32>} : memref<1x4x256xf32, #tpu.memory_space<vmem>>, vector<1x4x256xf32>,
    return
  }
  func.func @transform_0(%arg0: i32, %arg1: i32) -> (i32, i32, i32) {
    %c0_i32 = arith.constant 0 : i32
    %c0_i32_0 = arith.constant 0 : i32
    return %arg0, %c0_i32, %arg1 : i32, i32, i32
  }
  func.func @transform_1(%arg0: i32, %arg1: i32) -> (i32, i32, i32) {
    %c0_i32 = arith.constant 0 : i32
    %c0_i32_0 = arith.constant 0 : i32
    %c0_i32_1 = arith.constant 0 : i32
    %c0_i32_2 = arith.constant 0 : i32
    return %c0_i32, %c0_i32_0, %c0_i32_1 : i32, i32, i32
  }
  func.func @transform_2(%arg0: i32, %arg1: i32) -> (i32, i32, i32) {
    %c0_i32 = arith.constant 0 : i32
    %c0_i32_0 = arith.constant 0 : i32
    return %arg0, %c0_i32, %arg1 : i32, i32, i32
  }
}

</mosaic_0001>

<bundles_post_ra>
// kernel: tpu_custom_call.1
= control target key start
LH: loop header
LB: loop body
LE: loop exit
PB: predicated region body
PF: predicated region fallthrough
CT: control target
= control target key end

     0   :  { %7 = vsyncpa [#allocation3], 0  ;;  %s735_s0 = inlined_call_operand.hbm [shape: f32[2,4,256], index: 0, kind: input, shape index: {}]   ;;  %s736_s1 = inlined_call_operand.vmem [shape: f32[1,4,1], index: 1, kind: input, shape index: {}]   ;;  %s737_s2 = inlined_call_operand.hbm [shape: f32[2,4,256], index: 2, kind: output, shape index: {}]  }
   0x1   :  { %9 = vsyncpa [#allocation3 + $0x1], 0 }
   0x2   :  { %10 = vsyncpa [#allocation4], 0 }
   0x3   :  { %12 = vsyncpa [#allocation4 + $0x1], 0  ;;  %s556_s9 = smov 0   ;;  %s558_s10 = smov 0  }
   0x4   :  { %s560_s11 = smov 0   ;;  %s562_s12 = smov 0  }
   0x5   :  { %s564_s13 = smov 0   ;;  %s566_s14 = smov 0  }
   0x6 LB: > { %s335_s15 = sadd.s32 4294967295, %s536_s14   ;;  %s336_s16 = sadd.s32 4294967294, %s536_s14   ;;  %s536_s14 = sphi %s566_s14, %s18_s14   ;;  %s532_s13 = sphi %s564_s13, %s753_s13   ;;  %s528_s12 = sphi %s562_s12, %s752_s12   ;;  %s524_s11 = sphi %s560_s11, %s751_s11   ;;  %s520_s10 = sphi %s558_s10, %s750_s10   ;;  %s516_s9 = sphi %s556_s9, %s749_s9  }
   0x7   : > { %s30_s17 = sadd.s32 1, %s532_s13  ;;  %s39_s18 = sadd.s32 1, %s524_s11 }
   0x8   : > { %p32_p0 = scmp.ge.s32.totalorder %s30_s17, 2  ;;  %p46_p1 = scmp.ne.s32.totalorder %s524_s11, %s520_s10 }
   0x9   : > { %p47_p2 = scmp.eq.s32.totalorder %s536_s14, 0  ;;  %p52_p3 = scmp.ne.s32.totalorder %s520_s10, %s516_s9 }
   0xa   : > { %s755_s17 = smov (%p32_p0, %s30_s17), 0  ;;  %p53_p5 = scmp.eq.s32.totalorder %s335_s15, 0 }
   0xb   : > { %p597_p4 = por %p47_p2, %p46_p1  ;;  %s34_s20 = ssub.s32 %s532_s13, %s755_s17 }
   0xc   : > { %p99_p6 = scmp.eq.s32.totalorder %s335_s15, 1  ;;  %p37_p7 = scmp.eq.s32.totalorder %s34_s20, 0 }
   0xd   : > { %p603_p8 = por %p53_p5, %p52_p3  ;;  %p105_p10 = scmp.eq.s32.totalorder %s336_s16, 1 }
   0xe   : > { %p607_p9 = por %p99_p6, %p46_p1  ;;  %p364_p13 = scmp.lt.s32.totalorder %s536_s14, 2 }
   0xf   : > { %s612_s23 = scalar_select %p37_p7, %s524_s11, %s39_s18  }
  0x10   : > { %s741_s22 = scalar_select %p607_p9, 1, 0 }
  0x11   : > { %p614_p11 = por %p105_p10, %p52_p3  ;;  %s128_s25 = sand.u32 1, %s524_s11  }
  0x12   : > { %s339_s26 = sshll.u32 %s128_s25, 3  ;;  %s350_s27 = sshll.u32 %s532_s13, 7 }
  0x13   : > { %s742_s24 = scalar_select %p614_p11, 1, 0 }
  0x14   : > { %s625_s30 = scalar_lea.hbm %s735_s0, %s350_s27  ;;  %s132_s3 = scalar_lea.vmem [#allocation2], %s339_s26 }
  0x15   : > { %s142_s4 = sshll.u32 %s132_s3, 4  ;;  %p631_p0 = pnand %p364_p13, %p597_p4  ;;  %s627_s4 = int_to_ptr.vmem [resolvable:$true] %s142_s4 }
  0x16   : > { %s129_s6 = scalar_lea.sflag [#allocation3], %s128_s25  ;;  %s424_s7 = scalar_lea.hbm %s625_s30, 128 }
  0x17   : > { %p425_p3 = scmp.ne.s32.totalorder %s625_s30, %s424_s7  ;;  %p426_p5 = pneg %p631_p0 }
  0x18   : > { %s429_s16 = scalar_lea.hbm %s735_s0, 256  ;;  %p430_p4 = scmp.lt.u32.totalorder %s625_s30, %s735_s0 }
  0x19   : > { %p427_p6 = pnand %p426_p5, %p425_p3  ;;  %p431_p10 = scmp.lt.u32.totalorder %s429_s16, %s424_s7 }
  0x1a   : > { %p433_p12 = scmp.lt.u32.totalorder %s424_s7, %s625_s30 }
  0x1b   : > { %p428_p7 = pneg %p427_p6  ;;  %p432_p13 = por %p431_p10, %p430_p4 }
  0x1d   : > { %p434_p1 = por %p433_p12, %p432_p13 }
  0x1f   : > { %p435_p2 = pnand %p434_p1, %p428_p7 }
  0x21   : > { %438 = shalt.err (!%p435_p2)
}
  0x22   : > { %s439_s20 = scalar_lea.vmem %s627_s4, 128  ;;  %s538_s25 = smov [#allocation2]  }
  0x23   : > { %p440_p3 = scmp.ne.s32.totalorder %s627_s4, %s439_s20  ;;  %s444_s26 = sshll.u32 %s538_s25, 4  ;;  %s445_s26 = int_to_ptr.vmem [resolvable:$false] %s444_s26 }
  0x24   : > { %s446_s27 = scalar_lea.vmem %s445_s26, 256  ;;  %p447_p9 = scmp.lt.s32.totalorder %s627_s4, %s445_s26 }
  0x25   : > { %p442_p6 = pnand %p440_p3, %p426_p5  ;;  %p448_p4 = scmp.lt.s32.totalorder %s446_s27, %s439_s20 }
  0x27   : > { %p443_p11 = pneg %p442_p6  ;;  %p449_p10 = por %p448_p4, %p447_p9 }
  0x29   : > { %p450_p12 = pnand %p449_p10, %p443_p11 }
  0x2b   : > { %453 = shalt.err (!%p450_p12)
}
  0x2c   : > { %359 = dma.hbm_to_vmem [thread:$0]  (!%p631_p0), %s625_s30, 128, %s627_s4, %s129_s6  }
  0x2d   : > { %p744_p1 = scmp.lt.s32.totalorder %s536_s14, 3  ;;  %p745_p2 = scmp.ge.s32.totalorder %s536_s14, 1 }
  0x2f   : > { %p148_p5 = pnand %p745_p2, %p744_p1 }
  0x30   : > { %s667_s28 = sand.u32 (!%p148_p5), 1, %s520_s10  }
  0x31   : > { %151 = sbr.rel (%p148_p5) target bundleno = 207 (0xcf), region = 28  ;;  %s343_s29 = sshll.u32 (!%p148_p5), %s667_s28, 3 }
  0x32   : > { %s154_s3 = scalar_lea.sflag (!%p148_p5), [#allocation3], %s667_s28  ;;  %s157_s5 = scalar_lea.vmem (!%p148_p5), [#allocation2], %s343_s29 }
  0x38   : > { %507 = dma.done.wait (%p603_p8), %s154_s3, 128  }
  0x39   : > { %509 = vsyncadd (%p603_p8), %s154_s3, 4294967168  ;;  %v539_v0 = vmov 0   ;;  %v181_v1 = vld [vmem:[%s736_s1] sm:$0xf]  ;;  %vm186_vm0 = vcmask 1043456   ;;  %s351_s21 = sshll.u32 %s528_s12, 7 }
  0x3a   : > { %415 = vset.pattern.permute.xlu0 %v539_v0  ;;  %v180_v2 = vld [vmem:[%s157_s5] sm:$0xff]  ;;  %s177_s6 = scalar_lea.vmem [#allocation5], %s343_s29  ;;  %s686_s16 = scalar_lea.hbm %s737_s2, %s351_s21 }
  0x3b   : > { %223 = vperm.xlu0 %415, %v181_v1   ;;  %v182_v3 = vmul.f32 %v180_v2, %v180_v2  ;;  %s251_s7 = sshll.u32 %s177_s6, 4  ;;  %s235_s18 = scalar_lea.sflag [#allocation4], %s667_s28  ;;  %s688_s7 = int_to_ptr.vmem [resolvable:$true] %s251_s7 }
  0x3c   : > { %s454_s19 = scalar_lea.vmem %s688_s7, 128  ;;  %p746_p9 = scmp.ne.s32.totalorder %s741_s22, 0 }
  0x3d   : > { %v184_v4 = vcombine.high %v182_v3, %v182_v3  ;;  %v187_v5 = vsel %vm186_vm0, %v182_v3, 0.0  ;;  %p455_p8 = scmp.ne.s32.totalorder %s688_s7, %s454_s19  ;;  %s540_s12 = smov [#allocation5]  }
  0x3e   : > { %v188_v7 = vrot.slane %v187_v5, 4  ;;  %s458_s20 = sshll.u32 %s540_s12, 4  ;;  %s459_s20 = int_to_ptr.vmem [resolvable:$false] %s458_s20 }
  0x3f   : > { %v194_v6 = vsel %vm186_vm0, %v184_v4, 0.0  ;;  %p456_p11 = pnand %p455_p8, %p746_p9  ;;  %s460_s25 = scalar_lea.vmem %s459_s20, 256 }
  0x40   : > { %v195_v8 = vrot.slane %v194_v6, 4  ;;  %v189_v9 = vadd.f32 %v188_v7, %v187_v5  ;;  %p461_p7 = scmp.lt.s32.totalorder %s688_s7, %s459_s20  ;;  %p462_p13 = scmp.lt.s32.totalorder %s460_s25, %s454_s19 }
  0x41   : > { %p457_p0 = pneg %p456_p11 }
  0x42   : > { %v196_v10 = vadd.f32 %v195_v8, %v194_v6  ;;  %v190_v11 = vrot.slane %v189_v9, 2  ;;  %p463_p3 = por %p462_p13, %p461_p7 }
  0x44   : > { %v197_v12 = vrot.slane %v196_v10, 2  ;;  %v191_v13 = vadd.f32 %v190_v11, %v189_v9  ;;  %p464_p6 = pnand %p463_p3, %p457_p0 }
  0x46   : > { %v198_v14 = vadd.f32 %v197_v12, %v196_v10  ;;  %v192_v15 = vrot.slane %v191_v13, 1 }
  0x48   : > { %v199_v16 = vrot.slane %v198_v14, 1  ;;  %v193_v17 = vadd.f32 %v192_v15, %v191_v13 }
  0x4a   : > { %v200_v18 = vadd.f32 %v199_v16, %v198_v14  ;;  %416 = vrsqrt.f32 %v193_v17  ;;  %vm203_vm1 = vcmp.eq.f32.partialorder %v193_v17, inf  ;;  %v206_v23 = vand.u32 2147483648, %v193_v17 }
  0x4b   : > { %vm205_vm3 = vcmp.eq.f32.partialorder %v193_v17, 0.0 }
  0x4c   : > { %418 = vrsqrt.f32 %v200_v18  ;;  %vm210_vm2 = vcmp.eq.f32.partialorder %v200_v18, inf  ;;  %v213_v25 = vand.u32 2147483648, %v200_v18  ;;  %vm212_vm4 = vcmp.eq.f32.partialorder %v200_v18, 0.0 }
  0x54   : > { %v417_v19 = vpop.eup %416 }
  0x55   : > { %v202_v21 = vmul.f32 %v417_v19, %v193_v17 }
  0x56   : > { %v419_v20 = vpop.eup %418 }
  0x57   : > { %v209_v22 = vmul.f32 %v419_v20, %v200_v18  ;;  %v204_v24 = vsel %vm203_vm1, %v193_v17, %v202_v21 }
  0x58   : > { %v207_v27 = vsel %vm205_vm3, %v206_v23, %v204_v24 }
  0x59   : > { %v211_v26 = vsel %vm210_vm2, %v200_v18, %v209_v22  ;;  %v215_v29 = vadd.f32 1e-10, %v207_v27 }
  0x5a   : > { %v214_v28 = vsel %vm212_vm4, %v213_v25, %v211_v26 }
  0x5b   : > { %v216_v30 = vadd.f32 1e-10, %v214_v28  ;;  %420 = vrcp.f32 %v215_v29 }
  0x5d   : > { %422 = vrcp.f32 %v216_v30 }
  0x65   : > { %v421_v31 = vpop.eup %420 }
  0x67   : > { %v423_v32 = vpop.eup %422 }
  0xba   : > { %v224_v33 = vpop.permute.xlu0 %223 }
  0xbb   : > { %v226_v34 = vmul.f32 %v421_v31, %v224_v33  ;;  %v227_v35 = vmul.f32 %v423_v32, %v224_v33 }
  0xbd   : > { %v230_v36 = vcombine.low %v226_v34, %v227_v35 }
  0xbf   : > { %v232_v37 = vmul.f32 %v230_v36, %v180_v2 }
  0xc1   : > { %233 = vst [vmem:[%s177_s6] sm:$0xff] %v232_v37 }
  0xc2   : > { %467 = shalt.err (!%p464_p6)
}
  0xc3   : > { %s468_s26 = scalar_lea.hbm %s686_s16, 128  ;;  %s472_s29 = scalar_lea.hbm %s737_s2, 256 }
  0xc4   : > { %p469_p4 = scmp.ne.s32.totalorder %s686_s16, %s468_s26  ;;  %p473_p1 = scmp.lt.u32.totalorder %s686_s16, %s737_s2 }
  0xc5   : > { %p474_p2 = scmp.lt.u32.totalorder %s472_s29, %s468_s26  ;;  %p476_p8 = scmp.lt.u32.totalorder %s468_s26, %s686_s16 }
  0xc6   : > { %p470_p10 = pnand %p469_p4, %p746_p9 }
  0xc7   : > { %p475_p5 = por %p474_p2, %p473_p1 }
  0xc8   : > { %p471_p12 = pneg %p470_p10 }
  0xc9   : > { %p477_p11 = por %p476_p8, %p475_p5 }
  0xcb   : > { %p478_p0 = pnand %p477_p11, %p471_p12 }
  0xcd   : > { %481 = shalt.err (!%p478_p0)
}
  0xce   : > { %354 = dma.vmem_to_hbm [thread:$0]  (%p746_p9), %s688_s7, 128, %s686_s16, %s235_s18  }
  0xcf PF: > { %s263_s30 = sand.u32 1, %s516_s9   ;;  %p747_p7 = scmp.ne.s32.totalorder %s742_s24, 0 }
  0xd0   : > { %p748_p13 = scmp.ge.s32.totalorder %s536_s14, 2  ;;  %s264_s4 = scalar_lea.sflag [#allocation4], %s263_s30 }
  0xd2   : > { %p361_p3 = pnand %p748_p13, %p747_p7 }
  0xd4   : > { %511 = dma.done.wait (!%p361_p3), %s264_s4, 128  }
  0xd5   : > { %513 = vsyncadd (!%p361_p3), %s264_s4, 4294967168  ;;  %s18_s14 = sadd.s32 1, %s536_s14   ;;  %s749_s9 = smov %s520_s10 }
  0xd6   : > { %p15_p6 = scmp.ge.s32.totalorder %s18_s14, 4   ;;  %s750_s10 = smov %s524_s11 }
  0xd7   : > { %s751_s11 = smov %s612_s23  ;;  %s752_s12 = smov %s532_s13 }
  0xd8   : > { %s753_s13 = smov %s755_s17  ;;  %17 = sbr.rel (!%p15_p6) target bundleno = 6 (0x6), region = 73 }
  0xdf   :  { %269 = vsyncpa [#allocation3], 1 }
  0xe0   :  { %271 = vsyncpa [#allocation3 + $0x1], 1 }
  0xe1   :  { %272 = vsyncpa [#allocation4], 1 }
  0xe2   :  { %274 = vsyncpa [#allocation4 + $0x1], 1 }

</bundles_post_ra>
